<compile_context>
chip_gen: v6e
topology: v6e:2x2x1
jax: 0.10.0
libtpu: 0.0.40
codegen_flags: <defaults>
</compile_context>

<pallas_src>
import jax
import jax.numpy as jnp
from jax.experimental import pallas as pl
from jax.experimental.pallas import tpu as pltpu


def siglu_kernel(x_ref, y_ref, beta_ref, o_ref):
    # x_ref, y_ref: (C2, TL) aligned channel-half tiles; beta_ref: (C2, 1); o_ref: (C2, TL)
    y = y_ref[...]
    swish_y = y * jax.nn.sigmoid(beta_ref[...] * y)
    o_ref[...] = (x_ref[...] * swish_y).astype(o_ref.dtype)


def _pick_tile_l(L: int, C2: int, itemsize: int) -> int:
    """Largest lane-dense (multiple-of-128) L-tile whose double-buffered footprint fits VMEM."""
    if L % 128 != 0:
        # Small / odd length: use the full extent as the block (equal-to-full-dim is always legal).
        return L
    # Per pipeline step we hold: 2 input halves + 1 output tile (x2 for double buffering).
    # Keep the single-step footprint <= ~12 MiB so double-buffered total stays <= ~24 MiB,
    # which fits v7x's 64 MiB physical / 32 MiB default-scoped VMEM with headroom.
    budget_bytes = 12 * 1024 * 1024
    per_l_elem_bytes = 3 * C2 * itemsize
    max_tl = max(128, budget_bytes // per_l_elem_bytes)
    for cand in (4096, 2048, 1024, 512, 256, 128):
        if cand <= max_tl and L % cand == 0:
            return cand
    return 128


def siglu(x: jax.Array, beta: jax.Array, *, init: float = 1.0) -> jax.Array:
    """SiGLU with chunk along dim=1 (channel dim). x: (B, C, L), beta: (1, C//2, 1)."""
    B, C, L = x.shape
    assert C % 2 == 0, "SiGLU requires an even channel count for chunk(2, dim=1)"
    C2 = C // 2
    assert beta.shape == (1, C2, 1)

    # Fold the Swish `init` into beta once in the wrapper (removes a per-step broadcast+add).
    beta_eff = (beta + jnp.asarray(init, dtype=beta.dtype))

    # Free reshape (contiguous view): the two channel halves become an explicit axis so each
    # half arrives as its own aligned (C2, TL) tile.
    x4 = x.reshape(B, 2, C2, L)

    tl = _pick_tile_l(L, C2, x.dtype.itemsize)
    num_l_tiles = L // tl

    # NOTE: for tiny inputs a plain jnp expression would beat the fixed per-step/launch overhead;
    # kept as a Pallas call here so the kernel path is always exercised.
    return pl.pallas_call(
        siglu_kernel,
        out_shape=jax.ShapeDtypeStruct((B, C2, L), x.dtype),
        grid_spec=pltpu.PrefetchScalarGridSpec(
            num_scalar_prefetch=0,
            grid=(B, num_l_tiles),
            in_specs=[
                # first channel half of x4: (B, 2, C2, L) -> (C2, TL) tile
                pl.BlockSpec((pl.Squeezed(), pl.Squeezed(), C2, tl),
                             lambda b, l: (b, 0, 0, l)),
                # second channel half of x4 (goes through Swish)
                pl.BlockSpec((pl.Squeezed(), pl.Squeezed(), C2, tl),
                             lambda b, l: (b, 1, 0, l)),
                # beta_eff: (1, C2, 1) -> (C2, 1), same block for every grid step
                pl.BlockSpec((pl.Squeezed(), C2, 1),
                             lambda b, l: (0, 0, 0)),
            ],
            out_specs=pl.BlockSpec((pl.Squeezed(), C2, tl),
                                   lambda b, l: (b, 0, l)),
        ),
        compiler_params=pltpu.CompilerParams(
            dimension_semantics=("parallel", "parallel"),
            vmem_limit_bytes=32 * 1024 * 1024,
        ),
    )(x4, x4, beta_eff)


if __name__ == "__main__":
    key = jax.random.PRNGKey(0)
    B, C, L = 2, 8, 256          # num_params = C = 8 -> Swish gets C//2 = 4 params
    x = jax.random.normal(key, (B, C, L), dtype=jnp.float32)

    # Parameter init matching the module: beta = zeros(num_params//2), dim=1 -> (1, C//2, 1).
    beta = jnp.zeros((1, C // 2, 1), dtype=jnp.float32)

    out = siglu(x, beta, init=1.0)
    out = jax.block_until_ready(out)

    # Pure-JAX reference.
    x_half, y_half = jnp.split(x, 2, axis=1)
    beta_eff = beta + 1.0
    ref = x_half * (y_half * jax.nn.sigmoid(beta_eff * y_half))

    assert out.shape == (B, C // 2, L)
    assert jnp.allclose(out, ref, atol=1e-6, rtol=1e-6)
    print("KERNEL_OK")
</pallas_src>

<mosaic_0001>
module attributes {stable_mosaic.version = 11 : i64} {
  func.func @siglu_kernel(%arg0: i32, %arg1: i32, %arg2: memref<1x1x4x256xf32, #tpu.memory_space<vmem>>, %arg3: memref<1x1x4x256xf32, #tpu.memory_space<vmem>>, %arg4: memref<1x4x1xf32, #tpu.memory_space<vmem>>, %arg5: memref<1x4x256xf32, #tpu.memory_space<vmem>>) attributes {dimension_semantics = [#tpu.dimension_semantics<parallel>, #tpu.dimension_semantics<parallel>], iteration_bounds = array<i64: 2, 1>, scalar_prefetch = 0 : i64, scratch_operands = 0 : i64, tpu.core_type = #tpu.core_type<tc>, window_params = [{transform_indices = @transform_0, window_bounds = array<i64: 1, 1, 4, 256>}, {transform_indices = @transform_1, window_bounds = array<i64: 1, 1, 4, 256>}, {pipeline_mode = #tpu.pipeline_mode<synchronous>, transform_indices = @transform_2, window_bounds = array<i64: 1, 4, 1>}, {transform_indices = @transform_3, window_bounds = array<i64: 1, 4, 256>}]} {
    %c0 = arith.constant 0 : index
    %c0_0 = arith.constant 0 : index
    %c0_1 = arith.constant 0 : index
    %c0_2 = arith.constant 0 : index
    %0 = vector.load %arg3[%c0, %c0_0, %c0_1, %c0_2] : memref<1x1x4x256xf32, #tpu.memory_space<vmem>>, vector<1x1x4x256xf32>
    %1 = vector.shape_cast %0 : vector<1x1x4x256xf32> to vector<4x256xf32>
    %c0_3 = arith.constant 0 : index
    %c0_4 = arith.constant 0 : index
    %c0_5 = arith.constant 0 : index
    %2 = vector.load %arg4[%c0_3, %c0_4, %c0_5] : memref<1x4x1xf32, #tpu.memory_space<vmem>>, vector<1x4x1xf32>
    %3 = vector.shape_cast %2 : vector<1x4x1xf32> to vector<4x1xf32>
    %4 = vector.broadcast %3 : vector<4x1xf32> to vector<4x256xf32>
    %5 = arith.mulf %4, %1 : vector<4x256xf32>
    %6 = arith.negf %5 : vector<4x256xf32>
    %7 = math.exp %6 : vector<4x256xf32>
    %cst = arith.constant 1.000000e+00 : f32
    %8 = vector.broadcast %cst : f32 to vector<4x256xf32>
    %9 = arith.addf %8, %7 : vector<4x256xf32>
    %10 = arith.divf %8, %9 : vector<4x256xf32>
    %11 = arith.mulf %1, %10 : vector<4x256xf32>
    %c0_6 = arith.constant 0 : index
    %c0_7 = arith.constant 0 : index
    %c0_8 = arith.constant 0 : index
    %c0_9 = arith.constant 0 : index
    %12 = vector.load %arg2[%c0_6, %c0_7, %c0_8, %c0_9] : memref<1x1x4x256xf32, #tpu.memory_space<vmem>>, vector<1x1x4x256xf32>
    %13 = vector.shape_cast %12 : vector<1x1x4x256xf32> to vector<4x256xf32>
    %14 = arith.mulf %13, %11 : vector<4x256xf32>
    %c0_10 = arith.constant 0 : index
    %c0_11 = arith.constant 0 : index
    %c0_12 = arith.constant 0 : index
    %15 = vector.load %arg5[%c0_10, %c0_11, %c0_12] : memref<1x4x256xf32, #tpu.memory_space<vmem>>, vector<1x4x256xf32>
    %16 = vector.shape_cast %15 : vector<1x4x256xf32> to vector<4x256xf32>
    %17 = vector.shape_cast %14 : vector<4x256xf32> to vector<1x4x256xf32>
    tpu.vector_store %arg5[%c0_10, %c0_11, %c0_12], %17 {strides = array<i32>} : memref<1x4x256xf32, #tpu.memory_space<vmem>>, vector<1x4x256xf32>,
    return
  }
  func.func @transform_0(%arg0: i32, %arg1: i32) -> (i32, i32, i32, i32) {
    %c0_i32 = arith.constant 0 : i32
    %c0_i32_0 = arith.constant 0 : i32
    %c0_i32_1 = arith.constant 0 : i32
    return %arg0, %c0_i32, %c0_i32_0, %arg1 : i32, i32, i32, i32
  }
  func.func @transform_1(%arg0: i32, %arg1: i32) -> (i32, i32, i32, i32) {
    %c1_i32 = arith.constant 1 : i32
    %c0_i32 = arith.constant 0 : i32
    %c0_i32_0 = arith.constant 0 : i32
    return %arg0, %c1_i32, %c0_i32, %arg1 : i32, i32, i32, i32
  }
  func.func @transform_2(%arg0: i32, %arg1: i32) -> (i32, i32, i32) {
    %c0_i32 = arith.constant 0 : i32
    %c0_i32_0 = arith.constant 0 : i32
    %c0_i32_1 = arith.constant 0 : i32
    %c0_i32_2 = arith.constant 0 : i32
    return %c0_i32, %c0_i32_0, %c0_i32_1 : i32, i32, i32
  }
  func.func @transform_3(%arg0: i32, %arg1: i32) -> (i32, i32, i32) {
    %c0_i32 = arith.constant 0 : i32
    %c0_i32_0 = arith.constant 0 : i32
    return %arg0, %c0_i32, %arg1 : i32, i32, i32
  }
}

</mosaic_0001>

<bundles_post_ra>
// kernel: tpu_custom_call.1
= control target key start
LH: loop header
LB: loop body
LE: loop exit
PB: predicated region body
PF: predicated region fallthrough
CT: control target
= control target key end

     0   :  { %8 = vsyncpa [#allocation3], 0  ;;  %s849_s0 = inlined_call_operand.hbm [shape: f32[2,2,4,256], index: 0, kind: input, shape index: {}]   ;;  %s850_s1 = inlined_call_operand.hbm [shape: f32[2,2,4,256], index: 1, kind: input, shape index: {}]   ;;  %s851_s2 = inlined_call_operand.vmem [shape: f32[1,4,1], index: 2, kind: input, shape index: {}]   ;;  %s852_s3 = inlined_call_operand.hbm [shape: f32[2,4,256], index: 3, kind: output, shape index: {}]  }
   0x1   :  { %10 = vsyncpa [#allocation3 + $0x1], 0 }
   0x2   :  { %11 = vsyncpa [#allocation6], 0 }
   0x3   :  { %13 = vsyncpa [#allocation6 + $0x1], 0 }
   0x4   :  { %14 = vsyncpa [#allocation4], 0 }
   0x5   :  { %16 = vsyncpa [#allocation4 + $0x1], 0  ;;  %s680_s12 = smov 0   ;;  %s682_s13 = smov 0  }
   0x6   :  { %s684_s14 = smov 0   ;;  %s686_s15 = smov 0  }
   0x7   :  { %s688_s16 = smov 0   ;;  %s690_s17 = smov 0  }
   0x8 LB: > { %s411_s18 = sadd.s32 4294967295, %s654_s17   ;;  %s412_s19 = sadd.s32 4294967294, %s654_s17   ;;  %s654_s17 = sphi %s690_s17, %s22_s17   ;;  %s650_s16 = sphi %s688_s16, %s864_s16   ;;  %s646_s15 = sphi %s686_s15, %s863_s15   ;;  %s642_s14 = sphi %s684_s14, %s862_s14   ;;  %s638_s13 = sphi %s682_s13, %s861_s13   ;;  %s634_s12 = sphi %s680_s12, %s860_s12  }
   0x9   : > { %s34_s20 = sadd.s32 1, %s650_s16  ;;  %s43_s21 = sadd.s32 1, %s642_s14 }
   0xa   : > { %p36_p0 = scmp.ge.s32.totalorder %s34_s20, 2  ;;  %p50_p1 = scmp.ne.s32.totalorder %s642_s14, %s638_s13 }
   0xb   : > { %p51_p2 = scmp.eq.s32.totalorder %s654_s17, 0  ;;  %p56_p3 = scmp.ne.s32.totalorder %s638_s13, %s634_s12 }
   0xc   : > { %s866_s20 = smov (%p36_p0, %s34_s20), 0  ;;  %p57_p5 = scmp.eq.s32.totalorder %s411_s18, 0 }
   0xd   : > { %p721_p4 = por %p51_p2, %p50_p1  ;;  %s38_s23 = ssub.s32 %s650_s16, %s866_s20 }
   0xe   : > { %p131_p6 = scmp.eq.s32.totalorder %s411_s18, 1  ;;  %p41_p7 = scmp.eq.s32.totalorder %s38_s23, 0 }
   0xf   : > { %p727_p8 = por %p57_p5, %p56_p3  ;;  %p137_p10 = scmp.eq.s32.totalorder %s412_s19, 1 }
  0x10   : > { %p731_p9 = por %p131_p6, %p50_p1  ;;  %p452_p13 = scmp.lt.s32.totalorder %s654_s17, 2 }
  0x11   : > { %s736_s26 = scalar_select %p41_p7, %s642_s14, %s43_s21  }
  0x12   : > { %p738_p11 = por %p137_p10, %p56_p3  ;;  %s745_s28 = sand.u32 1, %s642_s14  }
  0x13   : > { %s415_s29 = sshll.u32 %s745_s28, 3  ;;  %s432_s30 = sshll.u32 %s650_s16, 8 }
  0x14   : > { %s172_s6 = scalar_lea.hbm %s849_s0, %s432_s30  ;;  %s164_s7 = scalar_lea.vmem [#allocation2], %s415_s29 }
  0x15   : > { %s174_s8 = sshll.u32 %s164_s7, 4  ;;  %p754_p0 = pnand %p452_p13, %p721_p4  ;;  %s175_s8 = int_to_ptr.vmem [resolvable:$true] %s174_s8 }
  0x16   : > { %p421_p1 = scmp.ge.s32.totalorder %s654_s17, 1  ;;  %p201_p2 = scmp.lt.s32.totalorder %s654_s17, 3 }
  0x17   : > { %s161_s10 = scalar_lea.sflag [#allocation3], %s745_s28  ;;  %p515_p3 = pneg %p754_p0 }
  0x18   : > { %s526_s11 = scalar_lea.vmem %s175_s8, 128  ;;  %s656_s18 = smov [#allocation2]  }
  0x19   : > { %p527_p5 = scmp.ne.s32.totalorder %s175_s8, %s526_s11  ;;  %s531_s19 = sshll.u32 %s656_s18, 4  ;;  %s532_s19 = int_to_ptr.vmem [resolvable:$false] %s531_s19 }
  0x1a   : > { %s533_s21 = scalar_lea.vmem %s532_s19, 256  ;;  %p534_p4 = scmp.lt.s32.totalorder %s175_s8, %s532_s19 }
  0x1b   : > { %p529_p6 = pnand %p527_p5, %p515_p3  ;;  %p535_p10 = scmp.lt.s32.totalorder %s533_s21, %s526_s11 }
  0x1d   : > { %p530_p7 = pneg %p529_p6  ;;  %p536_p13 = por %p535_p10, %p534_p4 }
  0x1f   : > { %p537_p12 = pnand %p536_p13, %p530_p7 }
  0x21   : > { %540 = shalt.err (!%p537_p12)
}
  0x22   : > { %444 = dma.hbm_to_vmem [thread:$0]  (!%p754_p0), %s172_s6, 128, %s175_s8, %s161_s10  }
  0x23   : > { %p772_p5 = pnand %p421_p1, %p201_p2  ;;  %s342_s5 = scalar_lea.hbm %s850_s1, %s432_s30 }
  0x24   : > { %s185_s7 = scalar_lea.vmem [#allocation5], %s415_s29  ;;  %s343_s18 = scalar_lea.hbm %s342_s5, 128 }
  0x25   : > { %s196_s11 = sshll.u32 %s185_s7, 4  ;;  %s182_s19 = scalar_lea.sflag [#allocation6], %s745_s28  ;;  %s197_s11 = int_to_ptr.vmem [resolvable:$true] %s196_s11 }
  0x26   : > { %s554_s21 = scalar_lea.vmem %s197_s11, 128  ;;  %s657_s6 = smov [#allocation5]  }
  0x27   : > { %p555_p12 = scmp.ne.s32.totalorder %s197_s11, %s554_s21  ;;  %s559_s8 = sshll.u32 %s657_s6, 4  ;;  %s560_s8 = int_to_ptr.vmem [resolvable:$false] %s559_s8 }
  0x28   : > { %s561_s10 = scalar_lea.vmem %s560_s8, 256  ;;  %p562_p1 = scmp.lt.s32.totalorder %s197_s11, %s560_s8 }
  0x29   : > { %p557_p6 = pnand %p555_p12, %p515_p3  ;;  %p563_p2 = scmp.lt.s32.totalorder %s561_s10, %s554_s21 }
  0x2b   : > { %p558_p7 = pneg %p557_p6  ;;  %p564_p4 = por %p563_p2, %p562_p1 }
  0x2d   : > { %p565_p10 = pnand %p564_p4, %p558_p7 }
  0x2f   : > { %568 = shalt.err (!%p565_p10)
}
  0x30   : > { %447 = dma.hbm_to_vmem [thread:$0]  (!%p754_p0), %s343_s18, 128, %s197_s11, %s182_s19  }
  0x31   : > { %205 = sbr.rel (%p772_p5) target bundleno = 237 (0xed), region = 32  ;;  %s788_s28 = sand.u32 (!%p772_p5), 1, %s638_s13  }
  0x32   : > { %s791_s29 = sshll.u32 (!%p772_p5), %s788_s28, 3  ;;  %s208_s30 = scalar_lea.sflag (!%p772_p5), [#allocation3], %s788_s28 }
  0x33   : > { %s211_s23 = scalar_lea.vmem (!%p772_p5), [#allocation2], %s791_s29 }
  0x36   : > { %621 = dma.done.wait (%p727_p8), %s208_s30, 128  }
  0x37   : > { %623 = vsyncadd (%p727_p8), %s208_s30, 4294967168  ;;  %s217_s9 = scalar_lea.sflag [#allocation6], %s788_s28  ;;  %s220_s22 = scalar_lea.vmem [#allocation5], %s791_s29 }
  0x38   : > { %625 = dma.done.wait (%p727_p8), %s217_s9, 128  }
  0x39   : > { %627 = vsyncadd (%p727_p8), %s217_s9, 4294967168  ;;  %v658_v0 = vmov 0   ;;  %v252_v1 = vld [vmem:[%s851_s2] sm:$0xf]  ;;  %v251_v2 = vld [vmem:[%s220_s22] sm:$0xff]  ;;  %s434_s24 = sshll.u32 %s646_s15, 7 }
  0x3a   : > { %503 = vset.pattern.permute.xlu0 %v658_v0  ;;  %v259_v3 = vcombine.high %v251_v2, %v251_v2  ;;  %v280_v16 = vld [vmem:[%s211_s23] sm:$0xff]  ;;  %s247_s7 = scalar_lea.vmem [#allocation7], %s791_s29  ;;  %s298_s21 = scalar_lea.hbm %s852_s3, %s434_s24 }
  0x3b   : > { %255 = vperm.xlu0 %503, %v252_v1   ;;  %s300_s11 = sshll.u32 %s247_s7, 4  ;;  %s284_s6 = scalar_lea.sflag [#allocation4], %s788_s28  ;;  %s301_s11 = int_to_ptr.vmem [resolvable:$true] %s300_s11 }
  0x3c   : > { %s570_s8 = scalar_lea.vmem %s301_s11, 128  ;;  %s659_s10 = smov [#allocation7]  }
  0x3d   : > { %p571_p8 = scmp.ne.s32.totalorder %s301_s11, %s570_s8  ;;  %s574_s30 = sshll.u32 %s659_s10, 4  ;;  %s575_s30 = int_to_ptr.vmem [resolvable:$false] %s574_s30 }
  0x3e   : > { %s576_s15 = scalar_lea.vmem %s575_s30, 256  ;;  %p577_p13 = scmp.lt.s32.totalorder %s301_s11, %s575_s30 }
  0x3f   : > { %p572_p0 = pnand %p571_p8, %p731_p9  ;;  %p578_p5 = scmp.lt.s32.totalorder %s576_s15, %s570_s8 }
  0x41   : > { %p573_p3 = pneg %p572_p0  ;;  %p579_p12 = por %p578_p5, %p577_p13 }
  0x43   : > { %p580_p6 = pnand %p579_p12, %p573_p3 }
  0xb6   : > { %v256_v4 = vpop.permute.xlu0 %255 }
  0xb7   : > { %v261_v5 = vmul.f32 %v256_v4, %v251_v2  ;;  %v262_v6 = vmul.f32 %v259_v3, %v256_v4 }
  0xb9   : > { %v425_v7 = vmul.f32 -1.442695, %v261_v5  ;;  %v426_v8 = vmul.f32 -1.442695, %v262_v6 }
  0xbb   : > { %505 = vpow2.f32 %v425_v7 }
  0xbc   : > { %507 = vpow2.f32 %v426_v8 }
  0xc8   : > { %v506_v9 = vpop.eup %505 }
  0xc9   : > { %v508_v10 = vpop.eup %507  ;;  %v269_v11 = vadd.f32 1.0, %v506_v9 }
  0xca   : > { %v270_v12 = vadd.f32 1.0, %v508_v10 }
  0xcb   : > { %509 = vrcp.f32 %v269_v11 }
  0xcc   : > { %511 = vrcp.f32 %v270_v12 }
  0xd8   : > { %v510_v13 = vpop.eup %509 }
  0xd9   : > { %v512_v14 = vpop.eup %511 }
  0xda   : > { %v277_v15 = vcombine.low %v510_v13, %v512_v14 }
  0xdc   : > { %v279_v17 = vmul.f32 %v277_v15, %v251_v2 }
  0xde   : > { %v281_v18 = vmul.f32 %v280_v16, %v279_v17 }
  0xe0   : > { %282 = vst [vmem:[%s247_s7] sm:$0xff] %v281_v18 }
  0xe1   : > { %583 = shalt.err (!%p580_p6)
}
  0xe2   : > { %s584_s29 = scalar_lea.hbm %s298_s21, 128  ;;  %s588_s9 = scalar_lea.hbm %s852_s3, 256 }
  0xe3   : > { %p585_p7 = scmp.ne.s32.totalorder %s298_s21, %s584_s29  ;;  %p589_p4 = scmp.lt.s32.totalorder %s298_s21, %s852_s3 }
  0xe4   : > { %p590_p10 = scmp.lt.s32.totalorder %s588_s9, %s584_s29 }
  0xe5   : > { %p586_p1 = pnand %p585_p7, %p731_p9 }
  0xe6   : > { %p591_p8 = por %p590_p10, %p589_p4 }
  0xe7   : > { %p587_p2 = pneg %p586_p1 }
  0xe9   : > { %p592_p0 = pnand %p591_p8, %p587_p2 }
  0xeb   : > { %595 = shalt.err (!%p592_p0)
}
  0xec   : > { %439 = dma.vmem_to_hbm [thread:$0]  (%p731_p9), %s301_s11, 128, %s298_s21, %s284_s6  }
  0xed PF: > { %s312_s5 = sand.u32 1, %s634_s12   ;;  %p859_p3 = scmp.ge.s32.totalorder %s654_s17, 2 }
  0xee   : > { %s313_s24 = scalar_lea.sflag [#allocation4], %s312_s5 }
  0xef   : > { %p449_p13 = pnand %p859_p3, %p738_p11 }
  0xf1   : > { %p450_p5 = pneg %p449_p13 }
  0xf3   : > { %629 = dma.done.wait (%p450_p5), %s313_s24, 128  }
  0xf4   : > { %631 = vsyncadd (%p450_p5), %s313_s24, 4294967168  ;;  %s22_s17 = sadd.s32 1, %s654_s17   ;;  %s860_s12 = smov %s638_s13 }
  0xf5   : > { %p19_p12 = scmp.ge.s32.totalorder %s22_s17, 4   ;;  %s861_s13 = smov %s642_s14 }
  0xf6   : > { %s862_s14 = smov %s736_s26  ;;  %s863_s15 = smov %s650_s16 }
  0xf7   : > { %s864_s16 = smov %s866_s20  ;;  %21 = sbr.rel (!%p19_p12) target bundleno = 8 (0x8), region = 90 }
  0xfc   :  { %318 = vsyncpa [#allocation3], 1 }
  0xfd   :  { %320 = vsyncpa [#allocation3 + $0x1], 1 }
  0xfe   :  { %321 = vsyncpa [#allocation6], 1 }
  0xff   :  { %323 = vsyncpa [#allocation6 + $0x1], 1 }
 0x100   :  { %324 = vsyncpa [#allocation4], 1 }
 0x101   :  { %326 = vsyncpa [#allocation4 + $0x1], 1 }

</bundles_post_ra>
